<compile_context>
chip_gen: v7x
topology: tpu7x:2x2x1
jax: 0.10.0
libtpu: 0.0.40
codegen_flags: <defaults>
</compile_context>

<pallas_src>
import jax
import jax.numpy as jnp
from jax.experimental import pallas as pl
from jax.experimental.pallas import tpu as pltpu

_HIDDEN = 300  # hard-coded in the PyTorch module (nn.Linear(nb_obs, 300))


def _round_up(n, m):
    return ((n + m - 1) // m) * m


def _gsde_kernel(x_ref, w1_ref, w2_ref, o_ref):
    # layer 1: x @ W1 (bf16 operands, f32 accumulation on the MXU), ReLU in f32
    h = jnp.dot(x_ref[...], w1_ref[...], preferred_element_type=jnp.float32)
    h = jnp.maximum(h, 0.0)
    # layer 2: h @ W2 (cast h back to the MXU operand dtype), tanh on the EUP
    y = jnp.dot(h.astype(w2_ref.dtype), w2_ref[...],
                preferred_element_type=jnp.float32)
    o_ref[...] = jnp.tanh(y).astype(o_ref.dtype)


def gsde_forward(x, params, *, tile_b=2048, compute_dtype=jnp.bfloat16):
    """Pallas forward of gSDE: (B, nb_obs) -> (B, nb_action)."""
    out_dtype = x.dtype
    # Explicit casts: both MXU operands in the compute dtype (no silent promotion).
    w1 = params["w1"].astype(compute_dtype)
    w2 = params["w2"].astype(compute_dtype)
    xc = x.astype(compute_dtype)

    B, nb_obs = x.shape
    hidden = w1.shape[1]
    nb_action = w2.shape[1]

    # Balanced batch tiling:
    #   1) choose the number of tiles from the requested cap,
    #   2) force it even (>1) so v7x's two TensorCores get equal work,
    #   3) split B evenly into 8-row-aligned tiles -> <8 padded rows per tile.
    num_tiles = pl.cdiv(B, tile_b)
    if num_tiles > 1 and num_tiles % 2 != 0:
        num_tiles += 1
    tb = _round_up(pl.cdiv(B, num_tiles), 8)
    b_pad = num_tiles * tb
    if b_pad != B:
        # Zero rows are benign: relu(0)=0, tanh(0)=0; sliced off below.
        xc = jnp.pad(xc, ((0, b_pad - B), (0, 0)))

    out = pl.pallas_call(
        _gsde_kernel,
        out_shape=jax.ShapeDtypeStruct((b_pad, nb_action), out_dtype),
        grid=(num_tiles,),
        in_specs=[
            pl.BlockSpec((tb, nb_obs), lambda i: (i, 0)),         # batch-tiled x
            pl.BlockSpec((nb_obs, hidden), lambda i: (0, 0)),     # resident W1
            pl.BlockSpec((hidden, nb_action), lambda i: (0, 0)),  # resident W2
        ],
        out_specs=pl.BlockSpec((tb, nb_action), lambda i: (i, 0)),
        compiler_params=pltpu.CompilerParams(
            dimension_semantics=("parallel",),   # 2-TC sharding on v7x
            vmem_limit_bytes=32 * 1024 * 1024,   # safe on v5e/v6e/v7x
        ),
    )(xc, w1, w2)
    return out[:B] if b_pad != B else out


def init_gsde_params(key, nb_obs, nb_action, std_gSDE, dtype=jnp.float32):
    """Matches the PyTorch init: nn.init.uniform(w, std_gSDE) == U(std_gSDE, 1.0).

    Weights are stored as (in_features, out_features) == torch weight transposed.
    """
    k1, k2 = jax.random.split(key)
    w1 = jax.random.uniform(k1, (nb_obs, _HIDDEN), jnp.float32, std_gSDE, 1.0)
    w2 = jax.random.uniform(k2, (_HIDDEN, nb_action), jnp.float32, std_gSDE, 1.0)
    return {"w1": w1.astype(dtype), "w2": w2.astype(dtype)}


def gsde_reference(x, params):
    """Pure-JAX f32 reference (mirrors the PyTorch forward)."""
    h = jax.nn.relu(jnp.dot(x, params["w1"]))
    return jnp.tanh(jnp.dot(h, params["w2"]))


if __name__ == "__main__":
    key = jax.random.PRNGKey(0)
    k_params, k_x1, k_x2 = jax.random.split(key, 3)

    B = 2
    nb_obs = 16
    nb_action = 8
    std_gSDE = 0.1

    params = init_gsde_params(k_params, nb_obs, nb_action, std_gSDE)

    # Small inputs (scaled so tanh is not fully saturated -> non-trivial check).
    ATOL = RTOL = 3e-2  # bf16 MXU operands vs f32 reference

    # 1) RL-style micro-batch (single tile, padded 2 -> 8 rows).
    x_small = 0.01 * jax.random.normal(k_x1, (B, nb_obs), jnp.float32)
    out_small = jax.block_until_ready(gsde_forward(x_small, params))
    ref_small = gsde_reference(x_small, params)
    assert out_small.shape == (B, nb_action), out_small.shape
    assert jnp.allclose(out_small, ref_small, atol=ATOL, rtol=RTOL)

    # 2) Larger batch, not a multiple of 8, single balanced tile (1030 -> 1032).
    B_big = 1030
    x_big = 0.01 * jax.random.normal(k_x2, (B_big, nb_obs), jnp.float32)
    out_big = jax.block_until_ready(gsde_forward(x_big, params))
    ref_big = gsde_reference(x_big, params)
    assert out_big.shape == (B_big, nb_action), out_big.shape
    assert jnp.allclose(out_big, ref_big, atol=ATOL, rtol=RTOL)

    # 3) Same batch, small tile cap -> multi-tile grid (even tile count,
    #    balanced tiles, resident weights across grid steps).
    out_tiled = jax.block_until_ready(gsde_forward(x_big, params, tile_b=256))
    assert out_tiled.shape == (B_big, nb_action), out_tiled.shape
    assert jnp.allclose(out_tiled, ref_big, atol=ATOL, rtol=RTOL)

    print("KERNEL_OK")
</pallas_src>

<mosaic_0001>
module attributes {stable_mosaic.version = 11 : i64} {
  func.func @_gsde_kernel(%arg0: i32, %arg1: memref<8x16xbf16, #tpu.memory_space<vmem>>, %arg2: memref<16x300xbf16, #tpu.memory_space<vmem>>, %arg3: memref<300x8xbf16, #tpu.memory_space<vmem>>, %arg4: memref<8x8xf32, #tpu.memory_space<vmem>>) attributes {dimension_semantics = [#tpu.dimension_semantics<parallel>], iteration_bounds = array<i64: 1>, scalar_prefetch = 0 : i64, scratch_operands = 0 : i64, tpu.core_type = #tpu.core_type<tc>, window_params = [{transform_indices = @transform_0, window_bounds = array<i64: 8, 16>}, {pipeline_mode = #tpu.pipeline_mode<synchronous>, transform_indices = @transform_1, window_bounds = array<i64: 16, 300>}, {pipeline_mode = #tpu.pipeline_mode<synchronous>, transform_indices = @transform_2, window_bounds = array<i64: 300, 8>}, {transform_indices = @transform_3, window_bounds = array<i64: 8, 8>}]} {
    %c0 = arith.constant 0 : index
    %c0_0 = arith.constant 0 : index
    %0 = vector.load %arg1[%c0, %c0_0] : memref<8x16xbf16, #tpu.memory_space<vmem>>, vector<8x16xbf16>
    %c0_1 = arith.constant 0 : index
    %c0_2 = arith.constant 0 : index
    %1 = vector.load %arg2[%c0_1, %c0_2] : memref<16x300xbf16, #tpu.memory_space<vmem>>, vector<16x300xbf16>
    %cst = arith.constant dense<0.000000e+00> : vector<8x300xf32>
    %2 = tpu.matmul %0, %1, %cst {dimension_numbers = #tpu.dot_dimension_numbers<[1], [0], [0], [1], [0, 0, 1, 1], [], []>} : vector<8x16xbf16>, vector<16x300xbf16>, vector<8x300xf32> -> vector<8x300xf32>
    %cst_3 = arith.constant 0.000000e+00 : f32
    %3 = vector.broadcast %cst_3 : f32 to vector<8x300xf32>
    %4 = arith.maximumf %2, %3 : vector<8x300xf32>
    %5 = arith.truncf %4 : vector<8x300xf32> to vector<8x300xbf16>
    %c0_4 = arith.constant 0 : index
    %c0_5 = arith.constant 0 : index
    %6 = vector.load %arg3[%c0_4, %c0_5] : memref<300x8xbf16, #tpu.memory_space<vmem>>, vector<300x8xbf16>
    %cst_6 = arith.constant dense<0.000000e+00> : vector<8x8xf32>
    %7 = tpu.matmul %5, %6, %cst_6 {dimension_numbers = #tpu.dot_dimension_numbers<[1], [0], [0], [1], [0, 0, 1, 1], [], []>} : vector<8x300xbf16>, vector<300x8xbf16>, vector<8x8xf32> -> vector<8x8xf32>
    %8 = math.tanh %7 : vector<8x8xf32>
    %c0_7 = arith.constant 0 : index
    %c0_8 = arith.constant 0 : index
    %9 = vector.load %arg4[%c0_7, %c0_8] : memref<8x8xf32, #tpu.memory_space<vmem>>, vector<8x8xf32>
    tpu.vector_store %arg4[%c0_7, %c0_8], %8 {strides = array<i32>} : memref<8x8xf32, #tpu.memory_space<vmem>>, vector<8x8xf32>,
    return
  }
  func.func @transform_0(%arg0: i32) -> (i32, i32) {
    %c0_i32 = arith.constant 0 : i32
    %c0_i32_0 = arith.constant 0 : i32
    return %arg0, %c0_i32 : i32, i32
  }
  func.func @transform_1(%arg0: i32) -> (i32, i32) {
    %c0_i32 = arith.constant 0 : i32
    %c0_i32_0 = arith.constant 0 : i32
    %c0_i32_1 = arith.constant 0 : i32
    return %c0_i32, %c0_i32_0 : i32, i32
  }
  func.func @transform_2(%arg0: i32) -> (i32, i32) {
    %c0_i32 = arith.constant 0 : i32
    %c0_i32_0 = arith.constant 0 : i32
    %c0_i32_1 = arith.constant 0 : i32
    return %c0_i32, %c0_i32_0 : i32, i32
  }
  func.func @transform_3(%arg0: i32) -> (i32, i32) {
    %c0_i32 = arith.constant 0 : i32
    %c0_i32_0 = arith.constant 0 : i32
    return %arg0, %c0_i32 : i32, i32
  }
}

</mosaic_0001>

<bundles_post_ra>
// kernel: tpu_custom_call.1
= control target key start
LH: loop header
LB: loop body
LE: loop exit
PB: predicated region body
PF: predicated region fallthrough
CT: control target
= control target key end

     0   :  { %v506_v2 = vmov 0   ;;  %vm37_vm0 = vcmask 130048   ;;  %v507_v6 = vmov 0.0   ;;  %vm508_vm1 = vmmov 0   ;;  %s613_s0 = inlined_call_operand.vmem [shape: bf16[8,16], index: 0, kind: input, shape index: {}]   ;;  %s614_s1 = inlined_call_operand.vmem [shape: bf16[16,300], index: 1, kind: input, shape index: {}]   ;;  %s615_s2 = inlined_call_operand.vmem [shape: bf16[300,8], index: 2, kind: input, shape index: {}]   ;;  %s616_s3 = inlined_call_operand.hbm [shape: f32[8,8], index: 3, kind: output, shape index: {}]  }
   0x1   :  { %v457_v0 = vld [vmem:[%s614_s1 + $0x4] ss:$12 sps:$4 sm:$0xff]   ;;  %v459_v1 = vld [vmem:[%s614_s1] ss:$12 sps:$4 sm:$0xff]   ;;  %73 = vmatprep.mubr.bf16.mxu1 %v506_v2  ;;  %v460_v4 = vld [vmem:[%s614_s1 + $0x8] ss:$12 sps:$4 sm:$0xff]  }
   0x2   :  { %v16_v3 = vld [vmem:[%s613_s0] sm:$0xf]  ;;  %41 = vmatprep.subr.bf16.mxu1 %v457_v0  ;;  %v463_v8 = vld [vmem:[%s615_s2 + $0x48] sm:$0xff]   ;;  %v465_v10 = vld [vmem:[%s615_s2 + $0x50] sm:$0xff]  }
   0x3   :  { %42 = vmatpush1.bf16.msra.mxu1 %v459_v1  ;;  %v461_v5 = vld [vmem:[%s615_s2 + $0x40] sm:$0xff]   ;;  %v464_v9 = vld [vmem:[%s615_s2 + $0x8] sm:$0xff]   ;;  %v466_v11 = vld [vmem:[%s615_s2 + $0x10] sm:$0xff]  }
   0x4   :  { %437 = vmatprep.subr.bf16.mxu1 %v507_v6  ;;  %v462_v7 = vld [vmem:[%s615_s2] sm:$0xff]   ;;  %411 = vmatprep.subr.bf16.mxu0 %v461_v5  ;;  %v467_v12 = vld [vmem:[%s615_s2 + $0x58] sm:$0xff]   ;;  %v471_v16 = vld [vmem:[%s615_s2 + $0x68] sm:$0xff]  }
   0x5   :  { %412 = vmatpush3.bf16.msra.mxu0 %v462_v7  ;;  %v468_v13 = vld [vmem:[%s615_s2 + $0x18] sm:$0xff]   ;;  %v469_v14 = vld [vmem:[%s615_s2 + $0x60] sm:$0xff]  }
   0x6   :  { %387 = vmatmul.mubr.msk.bf16.vlgmr.msra.gmra.mrb[0].mxu1 %vm37_vm0, %v16_v3  ;;  %413 = vmatprep.subr.bf16.mxu0 %v463_v8  ;;  %v470_v15 = vld [vmem:[%s615_s2 + $0x20] sm:$0xff]  }
   0x7   :  { %438 = vmatpush3.bf16.msra.mxu1 %v460_v4  ;;  %439 = vmatprep.mubr.msk.bf16.mxu1 %vm508_vm1, %v507_v6 }
   0x8   :  { %443 = vmatprep.subr.bf16.mxu1 %v507_v6 }
   0x9   :  { %414 = vmatpush3.bf16.msra.mxu0 %v464_v9 }
   0xa   :  { %415 = vmatprep.subr.bf16.mxu0 %v465_v10 }
   0xd   :  { %416 = vmatpush3.bf16.msra.mxu0 %v466_v11 }
   0xe   :  { %440 = vmatmul.mubr.msk.bf16.vlgmr.msra.gmra.mrb[4].mxu1 %vm37_vm0, %v16_v3  ;;  %417 = vmatprep.subr.bf16.mxu0 %v467_v12 }
   0xf   :  { %449 = vmatprep.mubr.msk.bf16.mxu1 %vm508_vm1, %v507_v6 }
  0x11   :  { %418 = vmatpush3.bf16.msra.mxu0 %v468_v13 }
  0x12   :  { %419 = vmatprep.subr.bf16.mxu0 %v469_v14 }
  0x13   :  { %8 = vsyncpa [#allocation3], 0  ;;  %v472_v17 = vld [vmem:[%s615_s2 + $0x28] sm:$0xff]   ;;  %v473_v18 = vld [vmem:[%s615_s2 + $0x70] sm:$0xff]   ;;  %vm283_vm2 = vcmask 1045504   ;;  %vm279_vm3 = vcmask 359424  }
  0x14   :  { %v474_v19 = vld [vmem:[%s615_s2 + $0x30] sm:$0xff]   ;;  %v475_v20 = vld [vmem:[%s615_s2 + $0x80] sm:$0xff]   ;;  %v476_v21 = vld [vmem:[%s615_s2 + $0x78] sm:$0xff]   ;;  %vm368_vm4 = vcmask 64512  }
  0x15   :  { %420 = vmatpush3.bf16.msra.mxu0 %v470_v15  ;;  %444 = vmatpush3.bf16.msra.mxu1 %v475_v20  ;;  %v477_v22 = vld [vmem:[%s615_s2 + $0x38] sm:$0xff]   ;;  %v478_v23 = vld [vmem:[%s615_s2 + $0x88] sm:$0xff]   ;;  %v479_v24 = vld [vmem:[%s615_s2 + $0x90] sm:$0x3f]   ;;  %s509_s2 = smov [#allocation2]  }
  0x16   :  { %421 = vmatprep.subr.bf16.mxu0 %v471_v16  ;;  %445 = vmatprep.subr.bf16.mxu1 %v507_v6  ;;  %v285_v25 = vsel %vm283_vm2, %v479_v24, 0  ;;  %s376_s27 = sshll.u32 %s509_s2, 4  ;;  %s377_s27 = int_to_ptr.vmem [resolvable:$true] %s376_s27 }
  0x17   :  { %s482_s28 = scalar_lea.vmem %s377_s27, 128  ;;  %p487_p1 = scmp.lt.s32.totalorder %s377_s27, %s377_s27 }
  0x18   :  { %p483_p0 = scmp.ne.s32.totalorder %s377_s27, %s482_s28  ;;  %p488_p2 = scmp.lt.s32.totalorder %s482_s28, %s482_s28 }
  0x19   :  { %422 = vmatpush3.bf16.msra.mxu0 %v472_v17  ;;  %446 = vmatpush3.bf16.msra.mxu1 %v478_v23 }
  0x1a   :  { %423 = vmatprep.subr.bf16.mxu0 %v473_v18  ;;  %447 = vmatprep.subr.bf16.mxu1 %v507_v6  ;;  %p489_p3 = por %p488_p2, %p487_p1 }
  0x1c   :  { %p490_p4 = pnand %p489_p3, %p483_p0 }
  0x1d   :  { %424 = vmatpush3.bf16.msra.mxu0 %v474_v19  ;;  %448 = vmatpush3.bf16.msra.mxu1 %v285_v25 }
  0x1e   :  { %425 = vmatprep.subr.bf16.mxu0 %v476_v21 }
  0x21   :  { %426 = vmatpush3.bf16.msra.mxu0 %v477_v22 }
  0xd9   :  { %v75_v26 = vpop.f32.mrb[0].mxu1 }
  0xda   :  { %v122_v27 = vmax.f32 %v75_v26, 0.0  ;;  %v77_v28 = vpop.f32.mrb[1].mxu1 }
  0xdb   :  { %v79_v29 = vpop.f32.mrb[2].mxu1  ;;  %v123_v30 = vmax.f32 %v77_v28, 0.0 }
  0xdc   :  { %v80_v31 = vpop.f32.mrb[3].mxu1  ;;  %v125_v33 = vpack.c.bf16 %v122_v27, %v122_v27 }
  0xdd   :  { %v126_v32 = vpack.c.bf16 %v123_v30, %v123_v30 }
  0xdf   :  { %319 = vmatprep.mubr.bf16.mxu0 %v126_v32 }
  0xe0   :  { %320 = vmatmul.mubr.bf16.vlgmr.msra.gmra.mrb[0].mxu0 %v125_v33 }
  0xe1   :  { %v116_v34 = vpop.f32.mrb[4].mxu1 }
  0xe2   :  { %v124_v35 = vmax.f32 %v116_v34, 0.0  ;;  %v441_v36 = vpop.f32.mrb[5].mxu1 }
  0xe3   :  { %v119_v37 = vpop.f32.mrb[6].mxu1 }
  0xe4   :  { %v127_v38 = vpack.c.bf16 %v124_v35, %v124_v35  ;;  %v442_v39 = vpop.f32.mrb[7].mxu1 }
  0xe6   :  { %450 = vmatmul.mubr.msk.bf16.vlgmr.msra.gmra.mrb[8].mxu1 %vm279_vm3, %v127_v38 }
 0x1b3   :  { %v427_v40 = vpop.f32.mrb[0].mxu0 }
 0x1b4   :  { %v428_v41 = vpop.f32.mrb[1].mxu0 }
 0x1b5   :  { %v429_v42 = vadd.f32 %v428_v41, %v427_v40  ;;  %v430_v43 = vpop.f32.mrb[2].mxu0 }
 0x1b6   :  { %v431_v44 = vpop.f32.mrb[3].mxu0 }
 0x1b9   :  { %v361_v45 = vpop.f32.mrb[8].mxu1 }
 0x1ba   :  { %v362_v46 = vadd.f32 %v429_v42, %v361_v45  ;;  %v451_v47 = vpop.f32.mrb[9].mxu1 }
 0x1bb   :  { %v364_v48 = vpop.f32.mrb[10].mxu1 }
 0x1bc   :  { %480 = vtanh.f32 %v362_v46  ;;  %v452_v49 = vpop.f32.mrb[11].mxu1 }
 0x1c6   :  { %v481_v50 = vpop.eup %480 }
 0x1c7   :  { %369 = vst.msk [vmem:[#allocation2] sm:$0xff] %vm368_vm4, %v481_v50 }
 0x1c8   :  { %493 = shalt.err (!%p490_p4)
}
 0x1c9   :  { %s494_s4 = scalar_lea.hbm %s616_s3, 128 }
 0x1ca   :  { %p495_p5 = scmp.ne.s32.totalorder %s616_s3, %s494_s4  ;;  %p498_p6 = scmp.lt.u32.totalorder %s494_s4, %s616_s3 }
 0x1cc   :  { %p500_p7 = pnand %p498_p6, %p495_p5 }
 0x1ce   :  { %503 = shalt.err (!%p500_p7)
}
 0x1cf   :  { %379 = dma.vmem_to_hbm [thread:$0]  %s377_s27, 128, %s616_s3, [#allocation3]  }
 0x1d0   :  { %504 = dma.done.wait [#allocation3], 128  }
 0x1d1   :  { %505 = vsyncadd [#allocation3], 4294967168 }
 0x1d2   :  { %383 = vsyncpa [#allocation3], 1 }

</bundles_post_ra>
